<compile_context>
chip_gen: v7x
topology: tpu7x:2x2x1
jax: 0.10.0
libtpu: 0.0.40
codegen_flags: <defaults>
</compile_context>

<pallas_src>
import jax
import jax.numpy as jnp
from jax.experimental import pallas as pl
from jax.experimental.pallas import tpu as pltpu

_LANE = 128
_DEFAULT_BLOCK_BYTES = 6 << 20      # ~6 MiB per block per buffer
_VMEM_LIMIT_BYTES = 32 << 20        # 2 x (in + out) blocks = ~24 MiB < 32 MiB


def _bias_layer_kernel(params_ref, x_ref, o_ref):
    """out = (alpha + 1) * x + beta   (beta pre-zeroed when bias=False)."""
    dt = x_ref.dtype
    a1 = (params_ref[0] + 1.0).astype(dt)   # scalar read from SMEM
    b = params_ref[1].astype(dt)            # compute in the input's native dtype
    o_ref[...] = x_ref[...] * a1 + b


def _round_up(v, m):
    return -(-v // m) * m


def _choose_block_rows(rows_total, lane_w, itemsize, row_align, block_bytes):
    """Row count per block: byte-budgeted, sublane-aligned, >=2 grid steps when possible."""
    if rows_total <= row_align:
        return rows_total                                   # one full-extent block
    target = max((block_bytes // (lane_w * itemsize)) // row_align, 1) * row_align
    # Prefer at least 2 grid steps so ("parallel",) shards across v7x's 2 TCs.
    half = _round_up(-(-rows_total // 2), row_align)
    return max(min(target, half), row_align)


def bias_layer_forward(x, alpha, beta, bias=True, *,
                       block_bytes=_DEFAULT_BLOCK_BYTES,
                       use_pallas=None, donate_input=False):
    """Pallas implementation of BiasLayer.forward.

    x:          arbitrary-shaped float array (logits)
    alpha/beta: (1,) float32 parameters
    bias:       static Python bool (as in the PyTorch module)
    """
    orig_shape = x.shape
    orig_dtype = x.dtype
    n = x.size

    alpha_s = jnp.asarray(alpha, jnp.float32).reshape(-1)[:1]
    beta_s = (jnp.asarray(beta, jnp.float32).reshape(-1)[:1]
              if bias else jnp.zeros((1,), jnp.float32))

    if use_pallas is None:
        use_pallas = n >= (1 << 20)   # tiny inputs: let XLA fuse (pure overhead otherwise)

    itemsize = jnp.dtype(orig_dtype).itemsize
    row_align = 8 if itemsize >= 4 else (16 if itemsize == 2 else 32)

    # ---- zero-copy retiling (no pad / no trim: those cost extra full HBM passes) ----
    lane_w = None
    rows_total = 0
    if use_pallas and n > 0:
        if n % _LANE == 0:
            # Lane-dense flattening; reshape of a contiguous array is free.
            lane_w = 512 if n % 512 == 0 else (256 if n % 256 == 0 else _LANE)
            rows_total = n // lane_w
        else:
            last = orig_shape[-1] if len(orig_shape) >= 1 else 1
            # Full-extent last block dim is always legal; Pallas masks the lane tail.
            if last >= 1 and 4 * row_align * last * itemsize <= (_VMEM_LIMIT_BYTES // 2):
                lane_w = last
                rows_total = n // last
            # else: huge ragged trailing dim -> fall through to fused XLA path.

    if lane_w is None or rows_total == 0:
        out = x.astype(jnp.float32) * (alpha_s[0] + 1.0) + beta_s[0]
        return out.astype(orig_dtype).reshape(orig_shape)

    x2d = x.reshape(rows_total, lane_w)                 # free metadata reshape
    params = jnp.concatenate([alpha_s, beta_s])         # [alpha, beta] -> SMEM

    block_rows = _choose_block_rows(rows_total, lane_w, itemsize, row_align, block_bytes)
    grid_steps = pl.cdiv(rows_total, block_rows)

    extra = {}
    if donate_input:
        # Output reuses x2d's buffer (halves peak HBM footprint). Only safe when
        # the caller donates x (e.g. jit donate_argnums); otherwise leave False.
        extra["input_output_aliases"] = {1: 0}

    out2d = pl.pallas_call(
        _bias_layer_kernel,
        out_shape=jax.ShapeDtypeStruct((rows_total, lane_w), orig_dtype),
        grid=(grid_steps,),
        in_specs=[
            pl.BlockSpec(memory_space=pltpu.MemorySpace.SMEM),     # [alpha, beta]
            pl.BlockSpec((block_rows, lane_w), lambda i: (i, 0)),  # x tile
        ],
        out_specs=pl.BlockSpec((block_rows, lane_w), lambda i: (i, 0)),
        compiler_params=pltpu.CompilerParams(
            dimension_semantics=("parallel",),          # shard grid across v7x's 2 TCs
            vmem_limit_bytes=_VMEM_LIMIT_BYTES,
        ),
        **extra,
    )(params, x2d)

    return out2d.reshape(orig_shape)


if __name__ == "__main__":
    key = jax.random.PRNGKey(0)

    # nn.Parameter(torch.zeros(1)) equivalents, nudged to exercise the math.
    alpha = jnp.full((1,), 0.5, dtype=jnp.float32)
    beta = jnp.full((1,), 0.25, dtype=jnp.float32)

    # (shape, dtype, block_bytes): small shapes that still exercise
    #   - a single full-extent lane-dense block,
    #   - a multi-step grid,
    #   - a non-multiple-of-128 trailing dim (masked lane tail, ragged row block),
    #   - native-dtype bf16 compute.
    tests = [
        ((2, 4, 16, 16), jnp.float32, _DEFAULT_BLOCK_BYTES),
        ((64, 128),      jnp.float32, 4096),
        ((72, 100),      jnp.float32, 4096),
        ((64, 128),      jnp.bfloat16, _DEFAULT_BLOCK_BYTES),
    ]

    def check(y, x, use_bias, dtype):
        ref = (alpha[0] + 1.0) * x.astype(jnp.float32) + (beta[0] if use_bias else 0.0)
        ref = ref.astype(dtype).astype(jnp.float32)
        tol = 1e-6 if dtype == jnp.float32 else 6e-2
        return (y.shape == x.shape and y.dtype == jnp.dtype(dtype)
                and bool(jnp.allclose(y.astype(jnp.float32), ref, atol=tol, rtol=tol)))

    ok = True
    for shape, dtype, blk in tests:
        key, sub = jax.random.split(key)
        x = jax.random.normal(sub, shape, dtype=jnp.float32).astype(dtype)
        for use_bias in (True, False):
            y = bias_layer_forward(x, alpha, beta, bias=use_bias,
                                   block_bytes=blk, use_pallas=True)
            jax.block_until_ready(y)
            if not check(y, x, use_bias, dtype):
                ok = False

    # Auto-dispatch path for tiny inputs (falls back to fused XLA elementwise).
    key, sub = jax.random.split(key)
    x_small = jax.random.normal(sub, (8, 32), dtype=jnp.float32)
    y_small = bias_layer_forward(x_small, alpha, beta, bias=True)
    jax.block_until_ready(y_small)
    if not check(y_small, x_small, True, jnp.float32):
        ok = False

    if ok:
        print("KERNEL_OK")
    else:
        raise SystemExit("BiasLayer kernel mismatch vs. reference")
</pallas_src>

<mosaic_0001>
module attributes {stable_mosaic.version = 11 : i64} {
  func.func @_bias_layer_kernel(%arg0: i32, %arg1: memref<2xf32, #tpu.memory_space<smem>>, %arg2: memref<4x512xf32, #tpu.memory_space<vmem>>, %arg3: memref<4x512xf32, #tpu.memory_space<vmem>>) attributes {dimension_semantics = [#tpu.dimension_semantics<parallel>], iteration_bounds = array<i64: 1>, scalar_prefetch = 0 : i64, scratch_operands = 0 : i64, tpu.core_type = #tpu.core_type<tc>, window_params = [{transform_indices = @transform_0, window_bounds = array<i64: 2>}, {transform_indices = @transform_1, window_bounds = array<i64: 4, 512>}, {transform_indices = @transform_2, window_bounds = array<i64: 4, 512>}]} {
    %c0 = arith.constant 0 : index
    %0 = memref.load %arg1[%c0] : memref<2xf32, #tpu.memory_space<smem>>
    %cst = arith.constant 1.000000e+00 : f32
    %1 = arith.addf %0, %cst : f32
    %c1 = arith.constant 1 : index
    %2 = memref.load %arg1[%c1] : memref<2xf32, #tpu.memory_space<smem>>
    %c0_0 = arith.constant 0 : index
    %c0_1 = arith.constant 0 : index
    %3 = vector.load %arg2[%c0_0, %c0_1] : memref<4x512xf32, #tpu.memory_space<vmem>>, vector<4x512xf32>
    %4 = vector.broadcast %1 : f32 to vector<4x512xf32>
    %5 = arith.mulf %3, %4 : vector<4x512xf32>
    %6 = vector.broadcast %2 : f32 to vector<4x512xf32>
    %7 = arith.addf %5, %6 : vector<4x512xf32>
    %c0_2 = arith.constant 0 : index
    %c0_3 = arith.constant 0 : index
    %8 = vector.load %arg3[%c0_2, %c0_3] : memref<4x512xf32, #tpu.memory_space<vmem>>, vector<4x512xf32>
    tpu.vector_store %arg3[%c0_2, %c0_3], %7 {strides = array<i32>} : memref<4x512xf32, #tpu.memory_space<vmem>>, vector<4x512xf32>,
    return
  }
  func.func @transform_0(%arg0: i32) -> i32 {
    %c0_i32 = arith.constant 0 : i32
    %c0_i32_0 = arith.constant 0 : i32
    return %c0_i32 : i32
  }
  func.func @transform_1(%arg0: i32) -> (i32, i32) {
    %c0_i32 = arith.constant 0 : i32
    %c0_i32_0 = arith.constant 0 : i32
    return %arg0, %c0_i32 : i32, i32
  }
  func.func @transform_2(%arg0: i32) -> (i32, i32) {
    %c0_i32 = arith.constant 0 : i32
    %c0_i32_0 = arith.constant 0 : i32
    return %arg0, %c0_i32 : i32, i32
  }
}

</mosaic_0001>

<bundles_post_ra>
// kernel: tpu_custom_call.1
= control target key start
LH: loop header
LB: loop body
LE: loop exit
PB: predicated region body
PF: predicated region fallthrough
CT: control target
= control target key end

     0   :  { %7 = vsyncpa [#allocation5], 0  ;;  %s182_s0 = inlined_call_operand.hbm [shape: f32[2], index: 0, kind: input, shape index: {}]   ;;  %s183_s1 = inlined_call_operand.hbm [shape: f32[4,512], index: 1, kind: input, shape index: {}]   ;;  %s184_s2 = inlined_call_operand.hbm [shape: f32[4,512], index: 2, kind: output, shape index: {}]  }
   0x1   :  { %8 = vsyncpa [#allocation3], 0 }
   0x2   :  { %9 = vsyncpa [#allocation4], 0  ;;  %s68_s11 = scalar_lea.hbm %s182_s0, 16 }
   0x3   :  { %p69_p0 = scmp.ne.s32.totalorder %s182_s0, %s68_s11  ;;  %p72_p1 = scmp.lt.u32.totalorder %s68_s11, %s182_s0 }
   0x5   :  { %p74_p2 = pnand %p72_p1, %p69_p0 }
   0x7   :  { %77 = shalt.err (!%p74_p2)
}
   0x8   :  { %s128_s16 = smov [#allocation2]   ;;  %s129_s19 = smov [#allocation6]  }
   0x9   :  { %17 = dma.hbm_to_smem %s182_s0, 16, %s128_s16, [#allocation5]  }
   0xa   :  { %s24_s20 = sshll.u32 %s129_s19, 4  ;;  %s78_s23 = scalar_lea.hbm %s183_s1, 256  ;;  %s25_s20 = int_to_ptr.vmem [resolvable:$true] %s24_s20 }
   0xb   :  { %p79_p3 = scmp.ne.s32.totalorder %s183_s1, %s78_s23  ;;  %p82_p4 = scmp.lt.u32.totalorder %s78_s23, %s183_s1 }
   0xd   :  { %p84_p5 = pnand %p82_p4, %p79_p3 }
   0xf   :  { %87 = shalt.err (!%p84_p5)
}
  0x10   :  { %s88_s28 = scalar_lea.vmem %s25_s20, 256  ;;  %p93_p7 = scmp.lt.s32.totalorder %s25_s20, %s25_s20 }
  0x11   :  { %p89_p6 = scmp.ne.s32.totalorder %s25_s20, %s88_s28  ;;  %p94_p8 = scmp.lt.s32.totalorder %s88_s28, %s88_s28 }
  0x13   :  { %p95_p9 = por %p94_p8, %p93_p7 }
  0x15   :  { %p96_p10 = pnand %p95_p9, %p89_p6 }
  0x17   :  { %99 = shalt.err (!%p96_p10)
}
  0x18   :  { %27 = dma.hbm_to_vmem [thread:$0]  %s183_s1, 256, %s25_s20, [#allocation3]  }
  0x19   :  { %122 = dma.done.wait [#allocation5], 16  }
  0x1a   :  { %123 = vsyncadd [#allocation5], 4294967280 }
  0x1b   :  { %124 = dma.done.wait [#allocation3], 256  }
  0x1c   :  { %125 = vsyncadd [#allocation3], 4294967040 }
  0x1d   :  { %34 = sfence }
  0x1e   :  { %s35_s30 = sld [smem:[#allocation2]]  ;;  %s64_s3 = sld [smem:[#allocation2 + $0x1]]  ;;  %v38_v0 = vld [vmem:[#allocation6] sm:$0xff]  ;;  %v39_v1 = vld [vmem:[#allocation6 + $0x8] sm:$0xff] }
  0x1f   :  { %s130_s5 = smov [#allocation7]  }
  0x20   :  { %s54_s6 = sshll.u32 %s130_s5, 4  ;;  %s55_s6 = int_to_ptr.vmem [resolvable:$true] %s54_s6 }
  0x21   :  { %s100_s1 = scalar_lea.vmem %s55_s6, 256  ;;  %p105_p12 = scmp.lt.s32.totalorder %s55_s6, %s55_s6 }
  0x22   :  { %p101_p11 = scmp.ne.s32.totalorder %s55_s6, %s100_s1  ;;  %p106_p13 = scmp.lt.s32.totalorder %s100_s1, %s100_s1 }
  0x24   :  { %s36_s4 = sadd.f32 1.0, %s35_s30  ;;  %v43_v3 = vstv %s64_s3  ;;  %p107_p0 = por %p106_p13, %p105_p12 }
  0x26   :  { %v40_v2 = vstv %s36_s4  ;;  %p108_p1 = pnand %p107_p0, %p101_p11 }
  0x27   :  { %v41_v4 = vmul.f32 %v40_v2, %v38_v0  ;;  %v42_v5 = vmul.f32 %v40_v2, %v39_v1 }
  0x29   :  { %v44_v6 = vadd.f32 %v43_v3, %v41_v4  ;;  %v45_v7 = vadd.f32 %v43_v3, %v42_v5 }
  0x2b   :  { %46 = vst [vmem:[#allocation7] sm:$0xff] %v44_v6  ;;  %47 = vst [vmem:[#allocation7 + $0x8] sm:$0xff] %v45_v7 }
  0x2c   :  { %111 = shalt.err (!%p108_p1)
}
  0x2d   :  { %s112_s9 = scalar_lea.hbm %s184_s2, 256 }
  0x2e   :  { %p113_p2 = scmp.ne.s32.totalorder %s184_s2, %s112_s9  ;;  %p116_p3 = scmp.lt.u32.totalorder %s112_s9, %s184_s2 }
  0x30   :  { %p118_p4 = pnand %p116_p3, %p113_p2 }
  0x32   :  { %121 = shalt.err (!%p118_p4)
}
  0x33   :  { %57 = dma.vmem_to_hbm [thread:$0]  %s55_s6, 256, %s184_s2, [#allocation4]  }
  0x34   :  { %126 = dma.done.wait [#allocation4], 256  }
  0x35   :  { %127 = vsyncadd [#allocation4], 4294967040 }
  0x36   :  { %61 = vsyncpa [#allocation3], 1 }
  0x37   :  { %62 = vsyncpa [#allocation4], 1 }
  0x38   :  { %63 = vsyncpa [#allocation5], 1 }

</bundles_post_ra>
